<compile_context>
chip_gen: v7x
topology: tpu7x:2x2x1
jax: 0.10.0
libtpu: 0.0.40
codegen_flags: <defaults>
</compile_context>

<pallas_src>
import math
import jax
import jax.numpy as jnp
import numpy as np
from jax.experimental import pallas as pl
from jax.experimental.pallas import tpu as pltpu


# ------------------------------ kernel ---------------------------------------
def _layerscale_kernel(x_ref, g_ref, o_ref):
    # x_ref: (RB, D) activation tile; g_ref: (1, D) gamma row (VPU broadcast).
    o_ref[...] = x_ref[...] * g_ref[...]


# ------------------------------ wrapper ---------------------------------------
def layer_scale(x, gamma, *, target_block_bytes=2 << 20, max_block_rows=8192):
    """LayerScale forward: x * gamma, gamma broadcast over all leading dims."""
    dim = gamma.shape[-1]
    assert x.shape[-1] == dim, "last dim of x must equal gamma dim"

    lead = x.shape[:-1]
    n = int(math.prod(lead)) if lead else 1

    # Cast gamma once to the activation dtype (keeps the multiply on the
    # narrow VALU path, halves vreg pressure for bf16 activations).
    g2 = gamma.reshape(1, dim).astype(x.dtype)
    x2 = x.reshape(n, dim)

    # ---- lane-density folding: make the working last dim a multiple of 128 ---
    # If dim is not lane-dense, fold k rows into the lane axis so output stores
    # are unmasked vst (pure layout plumbing; no extra compute).
    k = 1
    if dim % 128 != 0:
        k_cand = 128 // math.gcd(dim, 128)
        if k_cand > 1 and n % k_cand == 0:
            k = k_cand
    if k > 1:
        rows_total = n // k
        d_work = k * dim
        xw = x2.reshape(rows_total, d_work)
        gw = jnp.tile(g2, (1, k))
    else:
        rows_total = n
        d_work = dim
        xw = x2
        gw = g2

    # ---- row-tile sizing by VMEM byte budget ---------------------------------
    itemsize = jnp.dtype(x.dtype).itemsize
    sublane_mult = max(8, 32 // itemsize)          # 8 f32, 16 bf16, 32 int8/fp8
    bytes_per_row = d_work * itemsize
    rb = max(1, target_block_bytes // max(1, bytes_per_row))
    rb = min(rb, max_block_rows, rows_total)
    if rb < rows_total:
        # Not the full array: round down to the sublane-packing multiple
        # (block == full array is always legal, so skip rounding in that case).
        rb = max(sublane_mult, (rb // sublane_mult) * sublane_mult)
        rb = min(rb, rows_total)

    grid = (pl.cdiv(rows_total, rb),)

    cost = pl.CostEstimate(
        flops=n * dim,
        transcendentals=0,
        bytes_accessed=2 * n * dim * itemsize + dim * itemsize,
    )

    out = pl.pallas_call(
        _layerscale_kernel,
        out_shape=jax.ShapeDtypeStruct((rows_total, d_work), x.dtype),
        grid=grid,
        in_specs=[
            pl.BlockSpec((rb, d_work), lambda i: (i, 0)),   # activation row tile
            pl.BlockSpec((1, d_work), lambda i: (0, 0)),    # gamma, VMEM-resident
        ],
        out_specs=pl.BlockSpec((rb, d_work), lambda i: (i, 0)),
        compiler_params=pltpu.CompilerParams(
            dimension_semantics=("parallel",),
        ),
        cost_estimate=cost,
    )(xw, gw)

    return out.reshape(x.shape)


# ------------------------------ main -------------------------------------------
if __name__ == "__main__":
    key = jax.random.PRNGKey(0)
    kx, kg, kx2, kg2 = jax.random.split(key, 4)

    init_value = 1e-5

    # Case 1: lane-dense dim (128), f32 — exercises the plain path.
    B, S, DIM = 2, 8, 128
    x = jax.random.normal(kx, (B, S, DIM), jnp.float32)
    gamma_init = init_value * jnp.ones((DIM,), jnp.float32)
    gamma_trained = gamma_init + 0.01 * jax.random.normal(kg, (DIM,), jnp.float32)

    for g in (gamma_init, gamma_trained):
        out = jax.block_until_ready(layer_scale(x, g))
        ref = np.asarray(x) * np.asarray(g)
        np.testing.assert_allclose(np.asarray(out), ref, rtol=1e-6, atol=1e-7)

    # Case 2: small non-lane-dense dim (32), bf16 activations, f32 gamma —
    # exercises lane-folding (k=4 -> last dim 128) and the dtype cast.
    B2, S2, DIM2 = 2, 8, 32
    xb = jax.random.normal(kx2, (B2, S2, DIM2), jnp.float32).astype(jnp.bfloat16)
    gb = (init_value * jnp.ones((DIM2,), jnp.float32)
          + 0.01 * jax.random.normal(kg2, (DIM2,), jnp.float32))

    outb = jax.block_until_ready(layer_scale(xb, gb))
    gb_cast = np.asarray(gb.astype(jnp.bfloat16), np.float32)
    refb = np.asarray(xb, np.float32) * gb_cast
    np.testing.assert_allclose(np.asarray(outb, np.float32), refb,
                               rtol=2e-2, atol=1e-6)

    print("KERNEL_OK")
</pallas_src>

<mosaic_0001>
module attributes {stable_mosaic.version = 11 : i64} {
  func.func @_layerscale_kernel(%arg0: i32, %arg1: memref<16x128xf32, #tpu.memory_space<vmem>>, %arg2: memref<1x128xf32, #tpu.memory_space<vmem>>, %arg3: memref<16x128xf32, #tpu.memory_space<vmem>>) attributes {dimension_semantics = [#tpu.dimension_semantics<parallel>], iteration_bounds = array<i64: 1>, scalar_prefetch = 0 : i64, scratch_operands = 0 : i64, tpu.core_type = #tpu.core_type<tc>, window_params = [{transform_indices = @transform_0, window_bounds = array<i64: 16, 128>}, {pipeline_mode = #tpu.pipeline_mode<synchronous>, transform_indices = @transform_1, window_bounds = array<i64: 1, 128>}, {transform_indices = @transform_2, window_bounds = array<i64: 16, 128>}]} {
    %c0 = arith.constant 0 : index
    %c0_0 = arith.constant 0 : index
    %0 = vector.load %arg1[%c0, %c0_0] : memref<16x128xf32, #tpu.memory_space<vmem>>, vector<16x128xf32>
    %c0_1 = arith.constant 0 : index
    %c0_2 = arith.constant 0 : index
    %1 = vector.load %arg2[%c0_1, %c0_2] : memref<1x128xf32, #tpu.memory_space<vmem>>, vector<1x128xf32>
    %2 = vector.broadcast %1 : vector<1x128xf32> to vector<16x128xf32>
    %3 = arith.mulf %0, %2 : vector<16x128xf32>
    %c0_3 = arith.constant 0 : index
    %c0_4 = arith.constant 0 : index
    %4 = vector.load %arg3[%c0_3, %c0_4] : memref<16x128xf32, #tpu.memory_space<vmem>>, vector<16x128xf32>
    tpu.vector_store %arg3[%c0_3, %c0_4], %3 {strides = array<i32>} : memref<16x128xf32, #tpu.memory_space<vmem>>, vector<16x128xf32>,
    return
  }
  func.func @transform_0(%arg0: i32) -> (i32, i32) {
    %c0_i32 = arith.constant 0 : i32
    %c0_i32_0 = arith.constant 0 : i32
    return %arg0, %c0_i32 : i32, i32
  }
  func.func @transform_1(%arg0: i32) -> (i32, i32) {
    %c0_i32 = arith.constant 0 : i32
    %c0_i32_0 = arith.constant 0 : i32
    %c0_i32_1 = arith.constant 0 : i32
    return %c0_i32, %c0_i32_0 : i32, i32
  }
  func.func @transform_2(%arg0: i32) -> (i32, i32) {
    %c0_i32 = arith.constant 0 : i32
    %c0_i32_0 = arith.constant 0 : i32
    return %arg0, %c0_i32 : i32, i32
  }
}

</mosaic_0001>

<bundles_post_ra>
// kernel: tpu_custom_call.1
= control target key start
LH: loop header
LB: loop body
LE: loop exit
PB: predicated region body
PF: predicated region fallthrough
CT: control target
= control target key end

     0   :  { %7 = vsyncpa [#allocation3], 0  ;;  %s161_s0 = inlined_call_operand.hbm [shape: f32[16,128], index: 0, kind: input, shape index: {}]   ;;  %s162_s1 = inlined_call_operand.vmem [shape: f32[1,128], index: 1, kind: input, shape index: {}]   ;;  %s163_s2 = inlined_call_operand.hbm [shape: f32[16,128], index: 2, kind: output, shape index: {}]  }
   0x1   :  { %8 = vsyncpa [#allocation4], 0  ;;  %s109_s9 = smov [#allocation2]   ;;  %s61_s13 = scalar_lea.hbm %s161_s0, 256 }
   0x2   :  { %s14_s10 = sshll.u32 %s109_s9, 4  ;;  %p62_p0 = scmp.ne.s32.totalorder %s161_s0, %s61_s13  ;;  %s15_s10 = int_to_ptr.vmem [resolvable:$true] %s14_s10 }
   0x3   :  { %p65_p1 = scmp.lt.u32.totalorder %s61_s13, %s161_s0 }
   0x5   :  { %p67_p2 = pnand %p65_p1, %p62_p0 }
   0x7   :  { %70 = shalt.err (!%p67_p2)
}
   0x8   :  { %s71_s18 = scalar_lea.vmem %s15_s10, 256  ;;  %p76_p4 = scmp.lt.s32.totalorder %s15_s10, %s15_s10 }
   0x9   :  { %p72_p3 = scmp.ne.s32.totalorder %s15_s10, %s71_s18  ;;  %p77_p5 = scmp.lt.s32.totalorder %s71_s18, %s71_s18 }
   0xb   :  { %p78_p6 = por %p77_p5, %p76_p4 }
   0xd   :  { %p79_p7 = pnand %p78_p6, %p72_p3 }
   0xf   :  { %82 = shalt.err (!%p79_p7)
}
  0x10   :  { %s110_s19 = smov 128   ;;  %s111_s20 = smov 8  }
  0x11   :  { %20 = dma.hbm_to_vmem [thread:$0]  %s161_s0, 256, %s15_s10, [#allocation3], %s110_s19, %s110_s19, %s111_s20  }
  0x12   :  { %105 = dma.done.wait [#allocation3], 256  }
  0x13   :  { %106 = vsyncadd [#allocation3], 4294967040  ;;  %s112_s23 = smov [#allocation5]   ;;  %v26_v0 = vld [vmem:[#allocation2] sm:$0xff]  ;;  %v27_v2 = vld [vmem:[#allocation2 + $0x8] sm:$0xff] }
  0x14   :  { %s44_s24 = sshll.u32 %s112_s23, 4  ;;  %v56_v1 = vld [vmem:[%s162_s1] ss:$0 sm:$0xff]  ;;  %s45_s24 = int_to_ptr.vmem [resolvable:$true] %s44_s24 }
  0x15   :  { %v35_v3 = vmul.f32 %v56_v1, %v26_v0  ;;  %v36_v4 = vmul.f32 %v56_v1, %v27_v2  ;;  %s83_s27 = scalar_lea.vmem %s45_s24, 256  ;;  %p88_p9 = scmp.lt.s32.totalorder %s45_s24, %s45_s24 }
  0x16   :  { %p84_p8 = scmp.ne.s32.totalorder %s45_s24, %s83_s27  ;;  %p89_p10 = scmp.lt.s32.totalorder %s83_s27, %s83_s27 }
  0x17   :  { %37 = vst [vmem:[#allocation5] sm:$0xff] %v35_v3  ;;  %38 = vst [vmem:[#allocation5 + $0x8] sm:$0xff] %v36_v4 }
  0x18   :  { %p90_p11 = por %p89_p10, %p88_p9 }
  0x1a   :  { %p91_p12 = pnand %p90_p11, %p84_p8 }
  0x1c   :  { %94 = shalt.err (!%p91_p12)
}
  0x1d   :  { %s95_s29 = scalar_lea.hbm %s163_s2, 256 }
  0x1e   :  { %p96_p13 = scmp.ne.s32.totalorder %s163_s2, %s95_s29  ;;  %p99_p0 = scmp.lt.u32.totalorder %s95_s29, %s163_s2 }
  0x20   :  { %p101_p1 = pnand %p99_p0, %p96_p13 }
  0x22   :  { %104 = shalt.err (!%p101_p1)
}
  0x23   :  { %50 = dma.vmem_to_hbm [thread:$0]  %s45_s24, 256, %s163_s2, [#allocation4], %s110_s19, %s110_s19, %s111_s20  }
  0x24   :  { %107 = dma.done.wait [#allocation4], 256  }
  0x25   :  { %108 = vsyncadd [#allocation4], 4294967040 }
  0x26   :  { %54 = vsyncpa [#allocation3], 1 }
  0x27   :  { %55 = vsyncpa [#allocation4], 1 }

</bundles_post_ra>
